<compile_context>
chip_gen: v7x
topology: tpu7x:2x2x1
jax: 0.10.0
libtpu: 0.0.40
codegen_flags: <defaults>
</compile_context>

<pallas_src>
import functools
import math

import jax
import jax.numpy as jnp
from jax import lax
from jax.experimental import pallas as pl
from jax.experimental.pallas import tpu as pltpu


def _cdiv(a, b):
    return -(-a // b)


def _round_up(x, m):
    return ((x + m - 1) // m) * m


def _chip_plan():
    """Returns (parallel_cores, per-input block byte cap, vmem_limit_bytes|None)."""
    try:
        kind = jax.devices()[0].device_kind.lower()
    except Exception:  # pragma: no cover - interpret/CPU fallback
        return 1, 2 << 20, None
    if "v6" in kind:
        # v6e: 1 TensorCore, 128 MiB physical VMEM -> bigger blocks + explicit limit.
        return 1, 4 << 20, 64 << 20
    if "lite" in kind or "v5e" in kind:
        # v5e: 1 TensorCore, 16 MiB scoped-VMEM default -> 2 MiB blocks fit as-is.
        return 1, 2 << 20, None
    # v7x / v5p / v4: 2 TensorCores behind one device -> shard the sweep across
    # them.  2 MiB blocks (2 inputs x 2 buffers x 2 MiB = 8 MiB) stay well under
    # v7x's 32 MiB scoped default / 64 MiB physical VMEM.
    return 2, 2 << 20, None


def _bce_kernel(pred_ref, tgt_ref, w_ref, out_ref, *,
                steps, ts, valid_rows, need_mask):
    """One (ts, W) lane-dense block of the weighted BCE-with-logits sum.

    Accumulates w_blk^T @ bce into the (K, W) output block (resident across the
    reduction axis); the class-mask band contraction happens outside the kernel.
    """
    i = pl.program_id(1)

    @pl.when(i == 0)
    def _init():
        out_ref[...] = jnp.zeros_like(out_ref)

    x = pred_ref[...].astype(jnp.float32)
    z = tgt_ref[...].astype(jnp.float32)
    # Numerically stable BCE-with-logits (same formula PyTorch uses).
    bce = jnp.maximum(x, 0.0) - x * z + jnp.log1p(jnp.exp(-jnp.abs(x)))

    if need_mask:
        # Grid over-covers the flat rows: zero every row past the true row count
        # so garbage from the partial last block / clamped re-reads contributes
        # nothing (their row weights are already zero).
        row0 = (pl.program_id(0) * steps + i) * ts
        rid = row0 + lax.broadcasted_iota(jnp.int32, (ts, 1), 0)
        bce = jnp.where(rid < valid_rows, bce, 0.0)

    # Fused weight-apply + sublane reduction on the MXU:
    #   (K, ts) @ (ts, W) -> (K, W), accumulated into the resident output block.
    w_t = w_ref[...].T  # (ts, K) f32 -> (K, ts); cheap tile transpose
    out_ref[...] += jnp.dot(w_t, bce, preferred_element_type=jnp.float32)


def weighted_sigmoid_bce_loss(prediction, target, weights=None, class_indices=None,
                              *, num_cores=None, block_bytes=None):
    """Pallas implementation of WeightedSigmoidBinaryCELoss.forward ('mean')."""
    B, A, C = prediction.shape
    rows = B * A
    n_elems = rows * C
    itemsize = jnp.dtype(prediction.dtype).itemsize

    p_auto, cap_auto, vmem_limit = _chip_plan()
    P = int(num_cores) if num_cores is not None else p_auto
    cap = int(block_bytes) if block_bytes is not None else cap_auto

    # --- flat lane-dense layout: width W = K*C ---------------------------------
    K_min = 128 // math.gcd(C, 128)
    K = K_min if K_min <= 32 else 8          # guard the lcm blow-up for awkward C
    W = K * C

    # Class mask and the (K, W) "band" used only for the final O(K*W) contraction
    # (it is NOT streamed per grid step).
    if class_indices is None:
        mask = jnp.ones((C,), jnp.float32)
    else:
        mask = jnp.zeros((C,), jnp.float32).at[jnp.asarray(class_indices)].set(1.0)
    band = jnp.kron(jnp.eye(K, dtype=jnp.float32), mask[None, :])      # (K, W)

    # Row weights stay in f32 (never quantized to the prediction dtype).
    if weights is None:
        w_rows = jnp.ones((rows,), jnp.float32)
    else:
        w_rows = weights.reshape(rows).astype(jnp.float32)

    # --- pred/target: pure reshape when possible (no HBM copy) -----------------
    if rows % K == 0:
        R_data = rows // K
        pf = prediction.reshape(R_data, W)
        tf = target.reshape(R_data, W)
    else:
        # TODO(synk): fully copy-free tail handling (bulk reshape + tiny tail
        # pass); for now pad only up to the next flat row (< W extra elements).
        R_data = _cdiv(rows, K)
        pad = R_data * W - n_elems
        pf = jnp.pad(prediction.reshape(-1), (0, pad)).reshape(R_data, W)
        tf = jnp.pad(target.reshape(-1), (0, pad)).reshape(R_data, W)

    # --- tiling -----------------------------------------------------------------
    sub = {4: 8, 2: 16, 1: 32}.get(itemsize, 8)        # min sublane tile per dtype
    ts_max = max(sub, (cap // (W * itemsize)) // sub * sub)
    steps = max(1, _cdiv(R_data, P * ts_max))           # reduction axis ("arbitrary")
    ts = _round_up(max(1, _cdiv(R_data, P * steps)), sub)
    R_grid = P * steps * ts                              # rows covered by the grid
    need_mask = R_grid > R_data

    n_data_blocks = _cdiv(R_data, ts)
    last_blk = n_data_blocks - 1
    if P * steps > n_data_blocks:
        # Some grid positions lie entirely past the data: clamp their DMA to the
        # last real block (never an out-of-bounds DMA); the in-kernel row mask
        # plus zero weights make their contribution exactly 0.
        def data_idx(p, i):
            return (jnp.minimum(p * steps + i, last_blk), 0)
    else:
        def data_idx(p, i):
            return (p * steps + i, 0)

    # Row weights padded to the full grid extent (tiny: `rows` f32 = 1/C of the
    # data stream); padded rows carry weight 0.
    wf = jnp.pad(w_rows, (0, R_grid * K - rows)).reshape(R_grid, K)

    data_spec = pl.BlockSpec((ts, W), data_idx)
    w_spec = pl.BlockSpec((ts, K), lambda p, i: (p * steps + i, 0))
    out_spec = pl.BlockSpec((K, W), lambda p, i: (p, 0))

    kernel = functools.partial(_bce_kernel, steps=steps, ts=ts,
                               valid_rows=R_data, need_mask=need_mask)

    cp_kwargs = dict(dimension_semantics=("parallel", "arbitrary"))
    if vmem_limit is not None:
        cp_kwargs["vmem_limit_bytes"] = int(vmem_limit)

    partials = pl.pallas_call(
        kernel,
        out_shape=jax.ShapeDtypeStruct((P * K, W), jnp.float32),
        grid_spec=pltpu.PrefetchScalarGridSpec(
            num_scalar_prefetch=0,
            grid=(P, steps),
            in_specs=[data_spec, data_spec, w_spec],
            out_specs=out_spec,
        ),
        compiler_params=pltpu.CompilerParams(**cp_kwargs),
    )(pf, tf, wf)

    # Final band/class-mask contraction: O(P*K*W) (~tens of KB), negligible next
    # to the O(B*A*C) streaming work done inside the kernel.
    acc_kw = partials.reshape(P, K, W).sum(axis=0)
    return jnp.sum(acc_kw * band) / jnp.float32(n_elems)


def _reference(prediction, target, weights=None, class_indices=None):
    B, A, C = prediction.shape
    x = prediction.astype(jnp.float32)
    z = target.astype(jnp.float32)
    if weights is None:
        w = jnp.ones((B, A, 1), jnp.float32)
    else:
        w = weights.astype(jnp.float32)[..., None]
    if class_indices is not None:
        dense = jnp.zeros((C,), jnp.float32).at[jnp.asarray(class_indices)].set(1.0)
        w = w * dense[None, None, :]
    per = jnp.maximum(x, 0.0) - x * z + jnp.log1p(jnp.exp(-jnp.abs(x)))
    return jnp.mean(per * w)


if __name__ == "__main__":
    key = jax.random.PRNGKey(0)
    k1, k2, k3 = jax.random.split(key, 3)

    def check(name, pred, tgt, w=None, ci=None, tol=2e-5, **kw):
        got = jax.block_until_ready(weighted_sigmoid_bce_loss(pred, tgt, w, ci, **kw))
        want = _reference(pred, tgt, w, ci)
        assert jnp.allclose(got, want, atol=tol, rtol=tol), (name, got, want)

    # --- main shapes: B*A multiple of K -> pure-reshape fast path --------------
    B, A, C = 2, 1024, 4
    pred = jax.random.normal(k1, (B, A, C), dtype=jnp.float32)
    tgt = (jax.random.uniform(k2, (B, A, C)) > 0.5).astype(jnp.float32)
    w = jax.random.uniform(k3, (B, A), dtype=jnp.float32)
    check("weighted", pred, tgt, w)
    check("unweighted", pred, tgt)
    check("class_indices", pred, tgt, w, jnp.array([0, 2], dtype=jnp.int32))
    # bf16 inputs exercise the dtype-aware tiling (no wrapper upcast).
    check("bf16", pred.astype(jnp.bfloat16), tgt.astype(jnp.bfloat16), w, tol=1e-4)

    # --- small aligned case: partial last block handled by in-kernel masking ---
    predS = jax.random.normal(k1, (2, 16, 4), dtype=jnp.float32)
    tgtS = (jax.random.uniform(k2, (2, 16, 4)) > 0.5).astype(jnp.float32)
    wS = jax.random.uniform(k3, (2, 16), dtype=jnp.float32)
    check("small_fast", predS, tgtS, wS)

    # --- misaligned rows: minimal tail pad path ---------------------------------
    predT = jax.random.normal(k1, (2, 5, 4), dtype=jnp.float32)
    tgtT = (jax.random.uniform(k2, (2, 5, 4)) > 0.5).astype(jnp.float32)
    wT = jax.random.uniform(k3, (2, 5), dtype=jnp.float32)
    check("tail", predT, tgtT, wT)
    # Forced 2-way core split exercises the clamped index_map on any chip.
    check("tail_two_core", predT, tgtT, wT, num_cores=2)

    # --- K-guard path: gcd(C,128) small -> K capped at 8 ------------------------
    predG = jax.random.normal(k1, (2, 32, 6), dtype=jnp.float32)
    tgtG = (jax.random.uniform(k2, (2, 32, 6)) > 0.5).astype(jnp.float32)
    check("k_guard", predG, tgtG)

    print("KERNEL_OK")
</pallas_src>

<mosaic_0001>
module attributes {stable_mosaic.version = 11 : i64} {
  func.func @_bce_kernel(%arg0: i32, %arg1: i32, %arg2: memref<32x128xf32, #tpu.memory_space<vmem>>, %arg3: memref<32x128xf32, #tpu.memory_space<vmem>>, %arg4: memref<32x32xf32, #tpu.memory_space<vmem>>, %arg5: memref<32x128xf32, #tpu.memory_space<vmem>>) attributes {dimension_semantics = [#tpu.dimension_semantics<parallel>, #tpu.dimension_semantics<arbitrary>], iteration_bounds = array<i64: 2, 1>, scalar_prefetch = 0 : i64, scratch_operands = 0 : i64, tpu.core_type = #tpu.core_type<tc>, window_params = [{transform_indices = @transform_0, window_bounds = array<i64: 32, 128>}, {transform_indices = @transform_1, window_bounds = array<i64: 32, 128>}, {transform_indices = @transform_2, window_bounds = array<i64: 32, 32>}, {transform_indices = @transform_3, window_bounds = array<i64: 32, 128>}]} {
    %c0_i32 = arith.constant 0 : i32
    %0 = arith.cmpi eq, %arg1, %c0_i32 : i32
    %1 = arith.extui %0 : i1 to i32
    %c0_i32_0 = arith.constant 0 : i32
    %2 = arith.cmpi ne, %1, %c0_i32_0 : i32
    scf.if %2 {
      %cst_12 = arith.constant 0.000000e+00 : f32
      %21 = vector.broadcast %cst_12 : f32 to vector<32x128xf32>
      %c0_13 = arith.constant 0 : index
      %c0_14 = arith.constant 0 : index
      %22 = vector.load %arg5[%c0_13, %c0_14] : memref<32x128xf32, #tpu.memory_space<vmem>>, vector<32x128xf32>
      tpu.vector_store %arg5[%c0_13, %c0_14], %21 {strides = array<i32>} : memref<32x128xf32, #tpu.memory_space<vmem>>, vector<32x128xf32>,
    } else {
    }
    %c0 = arith.constant 0 : index
    %c0_1 = arith.constant 0 : index
    %3 = vector.load %arg2[%c0, %c0_1] : memref<32x128xf32, #tpu.memory_space<vmem>>, vector<32x128xf32>
    %c0_2 = arith.constant 0 : index
    %c0_3 = arith.constant 0 : index
    %4 = vector.load %arg3[%c0_2, %c0_3] : memref<32x128xf32, #tpu.memory_space<vmem>>, vector<32x128xf32>
    %cst = arith.constant 0.000000e+00 : f32
    %5 = vector.broadcast %cst : f32 to vector<32x128xf32>
    %6 = arith.maximumf %3, %5 : vector<32x128xf32>
    %7 = arith.mulf %3, %4 : vector<32x128xf32>
    %8 = arith.subf %6, %7 : vector<32x128xf32>
    %9 = math.absf %3 : vector<32x128xf32>
    %cst_4 = arith.constant 0.000000e+00 : f32
    %10 = vector.broadcast %cst_4 : f32 to vector<32x128xf32>
    %11 = arith.subf %10, %9 : vector<32x128xf32>
    %12 = math.exp %11 : vector<32x128xf32>
    %13 = math.log1p %12 : vector<32x128xf32>
    %14 = arith.addf %8, %13 : vector<32x128xf32>
    %c0_5 = arith.constant 0 : index
    %c0_6 = arith.constant 0 : index
    %15 = vector.load %arg4[%c0_5, %c0_6] : memref<32x32xf32, #tpu.memory_space<vmem>>, vector<32x32xf32>
    %16 = tpu.transpose %15, [1, 0] : vector<32x32xf32> -> vector<32x32xf32>
    %c0_7 = arith.constant 0 : index
    %c0_8 = arith.constant 0 : index
    %17 = vector.load %arg5[%c0_7, %c0_8] : memref<32x128xf32, #tpu.memory_space<vmem>>, vector<32x128xf32>
    %cst_9 = arith.constant dense<0.000000e+00> : vector<32x128xf32>
    %18 = tpu.matmul %16, %14, %cst_9 {dimension_numbers = #tpu.dot_dimension_numbers<[1], [0], [0], [1], [0, 0, 1, 1], [], []>} : vector<32x32xf32>, vector<32x128xf32>, vector<32x128xf32> -> vector<32x128xf32>
    %19 = arith.addf %17, %18 : vector<32x128xf32>
    %c0_10 = arith.constant 0 : index
    %c0_11 = arith.constant 0 : index
    %20 = vector.load %arg5[%c0_10, %c0_11] : memref<32x128xf32, #tpu.memory_space<vmem>>, vector<32x128xf32>
    tpu.vector_store %arg5[%c0_10, %c0_11], %19 {strides = array<i32>} : memref<32x128xf32, #tpu.memory_space<vmem>>, vector<32x128xf32>,
    return
  }
  func.func @transform_0(%arg0: i32, %arg1: i32) -> (i32, i32) {
    %c1_i32 = arith.constant 1 : i32
    %0 = arith.muli %arg0, %c1_i32 : i32
    %1 = arith.addi %0, %arg1 : i32
    %c0_i32 = arith.constant 0 : i32
    %c0_i32_0 = arith.constant 0 : i32
    return %1, %c0_i32 : i32, i32
  }
  func.func @transform_1(%arg0: i32, %arg1: i32) -> (i32, i32) {
    %c1_i32 = arith.constant 1 : i32
    %0 = arith.muli %arg0, %c1_i32 : i32
    %1 = arith.addi %0, %arg1 : i32
    %c0_i32 = arith.constant 0 : i32
    %c0_i32_0 = arith.constant 0 : i32
    return %1, %c0_i32 : i32, i32
  }
  func.func @transform_2(%arg0: i32, %arg1: i32) -> (i32, i32) {
    %c1_i32 = arith.constant 1 : i32
    %0 = arith.muli %arg0, %c1_i32 : i32
    %1 = arith.addi %0, %arg1 : i32
    %c0_i32 = arith.constant 0 : i32
    %c0_i32_0 = arith.constant 0 : i32
    return %1, %c0_i32 : i32, i32
  }
  func.func @transform_3(%arg0: i32, %arg1: i32) -> (i32, i32) {
    %c0_i32 = arith.constant 0 : i32
    %c0_i32_0 = arith.constant 0 : i32
    return %arg0, %c0_i32 : i32, i32
  }
}

</mosaic_0001>

<bundles_post_ra>
// kernel: tpu_custom_call.1
= control target key start
LH: loop header
LB: loop body
LE: loop exit
PB: predicated region body
PF: predicated region fallthrough
CT: control target
= control target key end

     0   :  { %8 = vsyncpa [#allocation3], 0  ;;  %s1115_s0 = inlined_call_operand.vmem [shape: f32[64,128], index: 0, kind: input, shape index: {}]   ;;  %s1116_s1 = inlined_call_operand.hbm [shape: f32[64,128], index: 1, kind: input, shape index: {}]   ;;  %s1117_s2 = inlined_call_operand.vmem [shape: f32[64,32], index: 2, kind: input, shape index: {}]   ;;  %s1118_s3 = inlined_call_operand.hbm [shape: f32[64,128], index: 3, kind: output, shape index: {}]  }
   0x1   :  { %10 = vsyncpa [#allocation3 + $0x1], 0 }
   0x2   :  { %11 = vsyncpa [#allocation4], 0 }
   0x3   :  { %13 = vsyncpa [#allocation4 + $0x1], 0  ;;  %s897_s12 = smov 0   ;;  %s899_s13 = smov 0  }
   0x4   :  { %s901_s14 = smov 0   ;;  %s903_s15 = smov 0  }
   0x5   :  { %s905_s16 = smov 0   ;;  %s907_s17 = smov 0  }
   0x6 LB: > { %s615_s18 = sadd.s32 4294967295, %s869_s17   ;;  %s616_s19 = sadd.s32 4294967294, %s869_s17   ;;  %s869_s17 = sphi %s907_s17, %s19_s17   ;;  %s865_s16 = sphi %s905_s16, %s1135_s16   ;;  %s861_s15 = sphi %s903_s15, %s1134_s15   ;;  %s857_s14 = sphi %s901_s14, %s1133_s14   ;;  %s853_s13 = sphi %s899_s13, %s1132_s13   ;;  %s849_s12 = sphi %s897_s12, %s1131_s12  }
   0x7   : > { %s31_s20 = sadd.s32 1, %s865_s16  ;;  %s68_s21 = sadd.s32 1, %s857_s14 }
   0x8   : > { %p33_p0 = scmp.ge.s32.totalorder %s31_s20, 2  ;;  %p75_p1 = scmp.ne.s32.totalorder %s857_s14, %s853_s13 }
   0x9   : > { %p76_p2 = scmp.eq.s32.totalorder %s869_s17, 0  ;;  %p81_p3 = scmp.ne.s32.totalorder %s853_s13, %s849_s12 }
   0xa   : > { %s1137_s20 = smov (%p33_p0, %s31_s20), 0  ;;  %p82_p5 = scmp.eq.s32.totalorder %s615_s18, 0 }
   0xb   : > { %p938_p4 = por %p76_p2, %p75_p1  ;;  %s65_s23 = ssub.s32 %s865_s16, %s1137_s20 }
   0xc   : > { %p133_p6 = scmp.eq.s32.totalorder %s615_s18, 1  ;;  %p66_p7 = scmp.eq.s32.totalorder %s65_s23, 0 }
   0xd   : > { %p944_p8 = por %p82_p5, %p81_p3  ;;  %p139_p10 = scmp.eq.s32.totalorder %s616_s19, 1 }
   0xe   : > { %p948_p9 = por %p133_p6, %p75_p1  ;;  %p686_p13 = scmp.lt.s32.totalorder %s869_s17, 2 }
   0xf   : > { %s953_s26 = scalar_select %p66_p7, %s857_s14, %s68_s21  }
  0x10   : > { %s1122_s25 = scalar_select %p948_p9, 1, 0 }
  0x11   : > { %p955_p11 = por %p139_p10, %p81_p3  ;;  %s170_s28 = sand.u32 1, %s857_s14  }
  0x12   : > { %s619_s29 = sshll.u32 %s170_s28, 5  ;;  %s638_s30 = sshll.u32 %s865_s16, 9 }
  0x13   : > { %s1123_s27 = scalar_select %p955_p11, 1, 0 }
  0x14   : > { %s966_s6 = scalar_lea.hbm %s1116_s1, %s638_s30  ;;  %s174_s7 = scalar_lea.vmem [#allocation2], %s619_s29 }
  0x15   : > { %s182_s8 = sshll.u32 %s174_s7, 4  ;;  %p972_p0 = pnand %p686_p13, %p938_p4  ;;  %s968_s8 = int_to_ptr.vmem [resolvable:$true] %s182_s8 }
  0x16   : > { %s977_s10 = scalar_lea.sflag [#allocation3], %s170_s28  ;;  %s757_s11 = scalar_lea.hbm %s966_s6, 512 }
  0x17   : > { %p758_p2 = scmp.ne.s32.totalorder %s966_s6, %s757_s11  ;;  %p759_p3 = pneg %p972_p0 }
  0x18   : > { %s762_s21 = scalar_lea.hbm %s1116_s1, 1024  ;;  %p763_p4 = scmp.lt.u32.totalorder %s966_s6, %s1116_s1 }
  0x19   : > { %p760_p5 = pnand %p759_p3, %p758_p2  ;;  %p764_p7 = scmp.lt.u32.totalorder %s762_s21, %s757_s11 }
  0x1a   : > { %p766_p13 = scmp.lt.u32.totalorder %s757_s11, %s966_s6 }
  0x1b   : > { %p761_p6 = pneg %p760_p5  ;;  %p765_p10 = por %p764_p7, %p763_p4 }
  0x1d   : > { %p767_p12 = por %p766_p13, %p765_p10 }
  0x1f   : > { %p768_p1 = pnand %p767_p12, %p761_p6 }
  0x21   : > { %771 = shalt.err (!%p768_p1)
}
  0x22   : > { %s772_s28 = scalar_lea.vmem %s968_s8, 512  ;;  %s871_s29 = smov [#allocation2]  }
  0x23   : > { %p773_p2 = scmp.ne.s32.totalorder %s968_s8, %s772_s28  ;;  %s777_s30 = sshll.u32 %s871_s29, 4  ;;  %s778_s30 = int_to_ptr.vmem [resolvable:$false] %s777_s30 }
  0x24   : > { %s779_s4 = scalar_lea.vmem %s778_s30, 1024  ;;  %p780_p9 = scmp.lt.s32.totalorder %s968_s8, %s778_s30 }
  0x25   : > { %p775_p5 = pnand %p773_p2, %p759_p3  ;;  %p781_p4 = scmp.lt.s32.totalorder %s779_s4, %s772_s28 }
  0x27   : > { %p776_p11 = pneg %p775_p5  ;;  %p782_p7 = por %p781_p4, %p780_p9 }
  0x29   : > { %p783_p10 = pnand %p782_p7, %p776_p11 }
  0x2b   : > { %786 = shalt.err (!%p783_p10)
}
  0x2c   : > { %s872_s5 = smov 128   ;;  %s873_s7 = smov 8  }
  0x2d   : > { %681 = dma.hbm_to_vmem [thread:$0]  (!%p972_p0), %s966_s6, 512, %s968_s8, %s977_s10, %s872_s5, %s872_s5, %s873_s7  }
  0x2e   : > { %p201_p12 = scmp.lt.s32.totalorder %s869_s17, 3  ;;  %p1125_p1 = scmp.ge.s32.totalorder %s869_s17, 1 }
  0x30   : > { %p202_p3 = pnand %p1125_p1, %p201_p12 }
  0x31   : > { %s1009_s11 = sand.u32 (!%p202_p3), 1, %s853_s13  }
  0x32   : > { %205 = sbr.rel (%p202_p3) target bundleno = 434 (0x1b2), region = 32  ;;  %s623_s18 = sshll.u32 (!%p202_p3), %s1009_s11, 5 }
  0x33   : > { %s208_s19 = scalar_lea.sflag (!%p202_p3), [#allocation3], %s1009_s11  ;;  %s1015_s21 = scalar_lea.vmem (!%p202_p3), [#allocation2], %s623_s18 }
  0x39   : > { %840 = dma.done.wait (%p944_p8), %s208_s19, 512  }
  0x3a   : > { %842 = vsyncadd (%p944_p8), %s208_s19, 4294966784  ;;  %s625_s6 = sshll.u32 %s861_s15, 2  ;;  %v277_v30 = vld [vmem:[%s1015_s21] sm:$0xff]  ;;  %v278_v32 = vld [vmem:[%s1015_s21 + $0x8] sm:$0xff]  ;;  %vm389_vm4 = vcmask 261120   ;;  %s245_s24 = scalar_lea.vmem [#allocation5], %s623_s18 }
  0x3b   : > { %p248_p9 = scmp.lt.s32.totalorder %s625_s6, 7  ;;  %v279_v33 = vld [vmem:[%s1015_s21 + $0x10] sm:$0xff]  ;;  %v280_v36 = vld [vmem:[%s1015_s21 + $0x18] sm:$0xff]  ;;  %s639_s30 = sshll.u32 %s861_s15, 9 }
  0x3c   : > { %s509_s4 = sshll.u32 %s245_s24, 4  ;;  %s1064_s19 = scalar_lea.hbm %s1118_s3, %s639_s30  ;;  %s1066_s4 = int_to_ptr.vmem [resolvable:$true] %s509_s4 }
  0x3d   : > { %s1139_s6 = smov (!%p248_p9, %s625_s6), 7  ;;  %s496_s21 = scalar_lea.sflag [#allocation4], %s1009_s11 }
  0x3e   : > { %s626_s8 = sshll.u32 %s1139_s6, 3  ;;  %s787_s18 = scalar_lea.vmem %s1066_s4, 512 }
  0x3f   : > { %s251_s22 = scalar_lea.vmem %s1115_s0, %s626_s8  ;;  %s261_s29 = scalar_lea.vmem %s1117_s2, %s626_s8 }
  0x40   : > { %v349_v0 = vld [vmem:[%s261_s29] sm:$0xff]  ;;  %v1030_v2 = vld [vmem:[%s251_s22 + $0x8] sm:$0xff]  ;;  %v1032_v3 = vld [vmem:[%s251_s22 + $0x10] sm:$0xff]  ;;  %p788_p8 = scmp.ne.s32.totalorder %s1066_s4, %s787_s18  ;;  %p1128_p11 = scmp.ne.s32.totalorder %s1122_s25, 0 }
  0x41   : > { %v1028_v1 = vld [vmem:[%s251_s22] sm:$0xff]  ;;  %353 = vxpose.xlu0.b32.start [1/4] (short) (narrow) %v349_v0, 32  ;;  %v1034_v4 = vld [vmem:[%s251_s22 + $0x18] sm:$0xff]  ;;  %v350_v6 = vld [vmem:[%s261_s29 + $0x8] sm:$0xff]  ;;  %v294_v7 = vand.u32 2147483647, %v1030_v2  ;;  %v286_v42 = vmul.f32 %v278_v32, %v1030_v2  ;;  %v287_v46 = vmul.f32 %v279_v33, %v1032_v3 }
  0x42   : > { %v293_v5 = vand.u32 2147483647, %v1028_v1  ;;  %v295_v8 = vand.u32 2147483647, %v1032_v3  ;;  %v296_v9 = vand.u32 2147483647, %v1034_v4  ;;  %v285_v38 = vmul.f32 %v277_v30, %v1028_v1  ;;  %p789_p0 = pnand %p788_p8, %p1128_p11 }
  0x43   : > { %v298_v11 = vsub.f32 0.0, %v294_v7  ;;  %v351_v14 = vld [vmem:[%s261_s29 + $0x10] sm:$0xff]  ;;  %v352_v19 = vld [vmem:[%s261_s29 + $0x18] sm:$0xff]  ;;  %v281_v37 = vmax.f32 %v1028_v1, 0.0  ;;  %v282_v41 = vmax.f32 %v1030_v2, 0.0  ;;  %v283_v45 = vmax.f32 %v1032_v3, 0.0 }
  0x44   : > { %v297_v10 = vsub.f32 0.0, %v293_v5  ;;  %v299_v12 = vsub.f32 0.0, %v295_v8  ;;  %v300_v13 = vsub.f32 0.0, %v296_v9  ;;  %v284_v48 = vmax.f32 %v1034_v4, 0.0  ;;  %p790_p6 = pneg %p789_p0  ;;  %s874_s15 = smov [#allocation5]  }
  0x45   : > { %354 = vxpose.xlu0.b32.cont [2/4] (short) (narrow) %v350_v6, 32  ;;  %v303_v16 = vmul.f32 1.442695, %v298_v11  ;;  %v288_v49 = vmul.f32 %v280_v36, %v1034_v4  ;;  %v289_v53 = vsub.f32 %v281_v37, %v285_v38  ;;  %v290_v58 = vsub.f32 %v282_v41, %v286_v42  ;;  %s791_s6 = sshll.u32 %s874_s15, 4  ;;  %s792_s6 = int_to_ptr.vmem [resolvable:$false] %s791_s6 }
  0x46   : > { %v301_v15 = vmul.f32 1.442695, %v297_v10  ;;  %v305_v17 = vmul.f32 1.442695, %v299_v12  ;;  %v307_v18 = vmul.f32 1.442695, %v300_v13  ;;  %v291_v63 = vsub.f32 %v283_v45, %v287_v46  ;;  %p794_p13 = scmp.lt.s32.totalorder %s1066_s4, %s792_s6 }
  0x47   : > { %v292_v6 = vsub.f32 %v284_v48, %v288_v49  ;;  %s793_s8 = scalar_lea.vmem %s792_s6, 1024 }
  0x48   : > { %741 = vpow2.f32 %v301_v15  ;;  %p795_p2 = scmp.lt.s32.totalorder %s793_s8, %s787_s18 }
  0x49   : > { %355 = vxpose.xlu0.b32.cont [3/4] (short) (narrow) %v351_v14, 32  ;;  %743 = vpow2.f32 %v303_v16 }
  0x4a   : > { %745 = vpow2.f32 %v305_v17  ;;  %p796_p5 = por %p795_p2, %p794_p13 }
  0x4b   : > { %747 = vpow2.f32 %v307_v18 }
  0x4c   : > { %p797_p4 = pnand %p796_p5, %p790_p6 }
  0x4d   : > { %356 = vxpose.xlu0.b32.end [4/4] (short) (narrow) %v352_v19, 32 }
  0x52   : > { %v742_v20 = vpop.eup %741 }
  0x53   : > { %v744_v21 = vpop.eup %743  ;;  %v309_v22 = vadd.f32 1.0, %v742_v20  ;;  %v312_v27 = vmul.f32 -0.5, %v742_v20  ;;  %v315_v39 = vand.u32 2147483647, %v742_v20 }
  0x54   : > { %v746_v23 = vpop.eup %745  ;;  %v318_v24 = vadd.f32 1.0, %v744_v21  ;;  %v321_v28 = vmul.f32 -0.5, %v744_v21  ;;  %v324_v43 = vand.u32 2147483647, %v744_v21 }
  0x55   : > { %v748_v25 = vpop.eup %747  ;;  %749 = vlog2.f32 %v309_v22  ;;  %v327_v26 = vadd.f32 1.0, %v746_v23  ;;  %v330_v31 = vmul.f32 -0.5, %v746_v23  ;;  %v313_v34 = vadd.f32 1.0, %v312_v27 }
  0x56   : > { %751 = vlog2.f32 %v318_v24  ;;  %v336_v29 = vadd.f32 1.0, %v748_v25  ;;  %v339_v35 = vmul.f32 -0.5, %v748_v25  ;;  %v322_v40 = vadd.f32 1.0, %v321_v28 }
  0x57   : > { %753 = vlog2.f32 %v327_v26  ;;  %v331_v44 = vadd.f32 1.0, %v330_v31  ;;  %v333_v47 = vand.u32 2147483647, %v746_v23  ;;  %v314_v50 = vmul.f32 %v742_v20, %v313_v34 }
  0x58   : > { %755 = vlog2.f32 %v336_v29  ;;  %v340_v51 = vadd.f32 1.0, %v339_v35  ;;  %vm1052_vm0 = vcmp.lt.f32.partialorder %v315_v39, 0.0004427343  ;;  %v323_v55 = vmul.f32 %v744_v21, %v322_v40 }
  0x59   : > { %v342_v56 = vand.u32 2147483647, %v748_v25  ;;  %vm325_vm1 = vcmp.lt.f32.partialorder %v324_v43, 0.0004427343  ;;  %v332_v60 = vmul.f32 %v746_v23, %v331_v44  ;;  %vm334_vm2 = vcmp.lt.f32.partialorder %v333_v47, 0.0004427343 }
  0x5a   : > { %v341_v2 = vmul.f32 %v748_v25, %v340_v51 }
  0x5b   : > { %vm343_vm3 = vcmp.lt.f32.partialorder %v342_v56, 0.0004427343 }
  0x5f   : > { %v750_v52 = vpop.eup %749 }
  0x60   : > { %v752_v57 = vpop.eup %751  ;;  %v311_v59 = vmul.f32 0.6931472, %v750_v52 }
  0x61   : > { %v754_v61 = vpop.eup %753  ;;  %v320_v62 = vmul.f32 0.6931472, %v752_v57 }
  0x62   : > { %v317_v0 = vsel %vm1052_vm0, %v314_v50, %v311_v59  ;;  %v329_v1 = vmul.f32 0.6931472, %v754_v61  ;;  %v756_v3 = vpop.eup %755 }
  0x63   : > { %v326_v4 = vsel %vm325_vm1, %v323_v55, %v320_v62  ;;  %v345_v5 = vadd.f32 %v317_v0, %v289_v53  ;;  %v338_v9 = vmul.f32 0.6931472, %v756_v3 }
  0x64   : > { %v346_v7 = vadd.f32 %v326_v4, %v290_v58  ;;  %v335_v8 = vsel %vm334_vm2, %v332_v60, %v329_v1 }
  0x65   : > { %v347_v10 = vadd.f32 %v335_v8, %v291_v63  ;;  %v344_v12 = vsel %vm343_vm3, %v341_v2, %v338_v9 }
  0x66   : > { %v662_v11 = vpack.c.bf16 %v346_v7, %v345_v5  ;;  %v348_v13 = vadd.f32 %v344_v12, %v292_v6 }
  0x68   : > { %663 = vmatprep.subr.bf16.mxu0 %v662_v11  ;;  %670 = vmatprep.subr.bf16.mxu1 %v662_v11  ;;  %v666_v14 = vpack.c.bf16 %v348_v13, %v347_v10 }
  0x69   : > { %665 = vmatpush3.bf16.msra.mxu0 %v662_v11  ;;  %672 = vmatpush3.bf16.msra.mxu1 %v662_v11 }
  0x6a   : > { %667 = vmatprep.subr.bf16.mxu0 %v666_v14  ;;  %671 = vmatprep.subr.bf16.mxu1 %v666_v14 }
  0x6d   : > { %669 = vmatpush3.bf16.msra.mxu0 %v666_v14  ;;  %673 = vmatpush3.bf16.msra.mxu1 %v666_v14 }
  0xc1   : > { %v369_v15 = vpop.trf.xlu0 }
  0xc2   : > { %656 = vmatprep.mubr.msk.f32.mxu0 %vm389_vm4, %v369_v15 }
  0xc5   : > { %v370_v16 = vpop.trf.xlu0 }
  0xc6   : > { %657 = vmatmul.mubr.msk.f32.vlgmr.msra.gmra.mrb[0].mxu0 %vm389_vm4, %v370_v16 }
  0xc9   : > { %v371_v17 = vpop.trf.xlu0 }
  0xca   : > { %659 = vmatprep.mubr.msk.f32.mxu1 %vm389_vm4, %v371_v17 }
  0xcd   : > { %v372_v18 = vpop.trf.xlu0 }
  0xce   : > { %660 = vmatmul.mubr.msk.f32.vlgmr.msra.gmra.mrb[0].mxu1 %vm389_vm4, %v372_v18 }
 0x199   : > { %v658_v19 = vpop.f32.mrb[0].mxu0 }
 0x19a   : > { %v468_v20 = vpop.f32.mrb[1].mxu0  ;;  %492 = vst [vmem:[%s245_s24 + $0x8] sm:$0xff] %v658_v19 }
 0x19b   : > { %491 = vst [vmem:[%s245_s24] sm:$0xff] %v468_v20 }
 0x1a1   : > { %v661_v21 = vpop.f32.mrb[0].mxu1 }
 0x1a2   : > { %v478_v22 = vpop.f32.mrb[1].mxu1  ;;  %494 = vst [vmem:[%s245_s24 + $0x18] sm:$0xff] %v661_v21 }
 0x1a3   : > { %493 = vst [vmem:[%s245_s24 + $0x10] sm:$0xff] %v478_v22 }
 0x1a4   : > { %800 = shalt.err (!%p797_p4)
}
 0x1a5   : > { %s801_s9 = scalar_lea.hbm %s1064_s19, 512  ;;  %s805_s23 = scalar_lea.hbm %s1118_s3, 1024 }
 0x1a6   : > { %p802_p7 = scmp.ne.s32.totalorder %s1064_s19, %s801_s9  ;;  %p806_p1 = scmp.lt.u32.totalorder %s1064_s19, %s1118_s3 }
 0x1a7   : > { %p807_p3 = scmp.lt.u32.totalorder %s805_s23, %s801_s9  ;;  %p809_p8 = scmp.lt.u32.totalorder %s801_s9, %s1064_s19 }
 0x1a8   : > { %p803_p10 = pnand %p802_p7, %p1128_p11 }
 0x1a9   : > { %p808_p9 = por %p807_p3, %p806_p1 }
 0x1aa   : > { %p804_p12 = pneg %p803_p10 }
 0x1ab   : > { %p810_p0 = por %p809_p8, %p808_p9 }
 0x1ad   : > { %p811_p6 = pnand %p810_p0, %p804_p12 }
 0x1af   : > { %814 = shalt.err (!%p811_p6)
}
 0x1b0   : > { %s875_s24 = smov 128   ;;  %s876_s30 = smov 8  }
 0x1b1   : > { %676 = dma.vmem_to_hbm [thread:$0]  (%p1128_p11), %s1066_s4, 512, %s1064_s19, %s496_s21, %s875_s24, %s875_s24, %s876_s30  }
 0x1b2 PF: > { %s524_s5 = sand.u32 1, %s849_s12   ;;  %p1129_p13 = scmp.ne.s32.totalorder %s1123_s27, 0 }
 0x1b3   : > { %p1130_p2 = scmp.ge.s32.totalorder %s869_s17, 2  ;;  %s525_s7 = scalar_lea.sflag [#allocation4], %s524_s5 }
 0x1b5   : > { %p683_p5 = pnand %p1130_p2, %p1129_p13 }
 0x1b7   : > { %844 = dma.done.wait (!%p683_p5), %s525_s7, 512  }
 0x1b8   : > { %846 = vsyncadd (!%p683_p5), %s525_s7, 4294966784  ;;  %s19_s17 = sadd.s32 1, %s869_s17   ;;  %s1131_s12 = smov %s853_s13 }
 0x1b9   : > { %p16_p4 = scmp.ge.s32.totalorder %s19_s17, 4   ;;  %s1132_s13 = smov %s857_s14 }
 0x1ba   : > { %s1133_s14 = smov %s953_s26  ;;  %s1134_s15 = smov %s865_s16 }
 0x1bb   : > { %s1135_s16 = smov %s1137_s20  ;;  %18 = sbr.rel (!%p16_p4) target bundleno = 6 (0x6), region = 87 }
 0x1c2   :  { %530 = vsyncpa [#allocation3], 1 }
 0x1c3   :  { %532 = vsyncpa [#allocation3 + $0x1], 1 }
 0x1c4   :  { %533 = vsyncpa [#allocation4], 1 }
 0x1c5   :  { %535 = vsyncpa [#allocation4 + $0x1], 1 }

</bundles_post_ra>
